<compile_context>
chip_gen: v7x
topology: tpu7x:2x2x1
jax: 0.10.0
libtpu: 0.0.40
codegen_flags: <defaults>
</compile_context>

<pallas_src>
import functools

import jax
import jax.numpy as jnp
from jax.experimental import pallas as pl
from jax.experimental.pallas import tpu as pltpu

LANE = 128
SUBLANE = 8


def _round_up(x: int, m: int) -> int:
    return ((x + m - 1) // m) * m


def _pick_tm(m_pad: int, f: int, c_pad: int, itemsize: int) -> int:
    """Row-tile size: large enough to hit the HBM roofline, >= 2 grid steps
    when the batch allows (so v7x's 2 TensorCores both get work), bounded by
    a conservative scoped-VMEM budget."""
    tm = min(512, m_pad)
    if m_pad >= 2 * SUBLANE and pl.cdiv(m_pad, tm) < 2:
        tm = _round_up(pl.cdiv(m_pad, 2), SUBLANE)
    tm = max(tm, SUBLANE)

    # 2 double-buffered x tiles + resident W + 2 out tiles; keep under ~24 MiB
    # so the v7x 32 MiB scoped-VMEM default has headroom.
    budget = 24 * 1024 * 1024
    def usage(t):
        return 2 * t * f * itemsize + f * c_pad * itemsize + 2 * t * c_pad * 4
    while tm > SUBLANE and usage(tm) > budget:
        tm = max(SUBLANE, _round_up(tm // 2, SUBLANE))
    # TODO(synk): if F is so large that the resident W alone blows VMEM, a
    # K-tiled fallback path would be needed; not the logistic-regression regime.
    return tm


def _prepare(x, w_fc, bias, compute_dtype):
    """Pad the (tiny) class dim to a lane-dense multiple of 128, sublane-align
    M if necessary, and cast the streamed operands to compute_dtype."""
    M, F = x.shape
    C = w_fc.shape[1]
    C_pad = _round_up(C, LANE)
    M_pad = _round_up(M, SUBLANE)
    if M_pad != M:
        # Only when M isn't sublane-aligned; avoids a full padded copy of x in
        # the common (M % 8 == 0) large-batch case.
        x = jnp.pad(x, ((0, M_pad - M), (0, 0)))
    x_c = x.astype(compute_dtype)
    w_p = jnp.pad(w_fc, ((0, 0), (0, C_pad - C))).astype(compute_dtype)
    b_p = jnp.pad(bias, (0, C_pad - C)).astype(jnp.float32).reshape(1, C_pad)
    return x_c, w_p, b_p, M, F, C, M_pad, C_pad


def _linear_kernel(x_ref, w_ref, b_ref, o_ref):
    # Whole-K dot on the MXU with f32 accumulation; bias folded into the same
    # epilogue.  No K grid axis, no scratch accumulator.
    acc = jnp.dot(x_ref[...], w_ref[...], preferred_element_type=jnp.float32)
    o_ref[...] = (acc + b_ref[...]).astype(o_ref.dtype)


def _argmax_kernel(x_ref, w_ref, b_ref, idx_ref, *, num_classes):
    logits = jnp.dot(x_ref[...], w_ref[...], preferred_element_type=jnp.float32)
    logits = logits + b_ref[...]
    c_pad = logits.shape[-1]
    col = jax.lax.broadcasted_iota(jnp.int32, logits.shape, dimension=1)
    valid = col < num_classes
    masked = jnp.where(valid, logits, -jnp.inf)   # padded class lanes can't win
    row_max = jnp.max(masked, axis=-1, keepdims=True)
    hit = (masked == row_max) & valid
    # First index attaining the max (torch.argmax tie-break); XLU lane reduce.
    idx = jnp.min(jnp.where(hit, col.astype(jnp.float32), jnp.float32(c_pad)),
                  axis=-1, keepdims=True)
    idx_ref[...] = idx.astype(jnp.int32)


def _in_specs(tm, F, C_pad):
    return [
        pl.BlockSpec((tm, F), lambda i: (i, 0)),      # x: stream M tiles, whole K
        pl.BlockSpec((F, C_pad), lambda i: (0, 0)),   # W: VMEM-resident, one fetch
        pl.BlockSpec((1, C_pad), lambda i: (0, 0)),   # bias: VMEM-resident
    ]


@functools.partial(jax.jit, static_argnames=("compute_dtype",))
def logistic_regression_forward(x, w_fc, bias, compute_dtype=jnp.bfloat16):
    """logits = x @ w_fc + bias.

    x:     [M, F]
    w_fc:  [F, C]  (PyTorch nn.Linear weight is [C, F]; import once as weight.T)
    bias:  [C]
    """
    out_dtype = x.dtype
    x_c, w_p, b_p, M, F, C, M_pad, C_pad = _prepare(x, w_fc, bias, compute_dtype)
    item = x_c.dtype.itemsize
    tm = _pick_tm(M_pad, F, C_pad, item)
    grid = (pl.cdiv(M_pad, tm),)

    out_p = pl.pallas_call(
        _linear_kernel,
        out_shape=jax.ShapeDtypeStruct((M_pad, C_pad), out_dtype),
        grid_spec=pltpu.PrefetchScalarGridSpec(
            num_scalar_prefetch=0,
            grid=grid,
            in_specs=_in_specs(tm, F, C_pad),
            out_specs=pl.BlockSpec((tm, C_pad), lambda i: (i, 0)),
        ),
        compiler_params=pltpu.CompilerParams(
            dimension_semantics=("parallel",),
        ),
        cost_estimate=pl.CostEstimate(
            flops=2 * M * F * C,
            transcendentals=0,
            bytes_accessed=(x_c.size * item + w_p.size * item
                            + b_p.size * 4 + M_pad * C_pad * out_dtype.itemsize),
        ),
    )(x_c, w_p, b_p)
    return out_p[:M, :C]


@functools.partial(jax.jit, static_argnames=("compute_dtype",))
def predict(x, w_fc, bias, compute_dtype=jnp.bfloat16):
    """argmax over classes, fused into the kernel so the padded (M, 128)
    logits are never written back to HBM."""
    x_c, w_p, b_p, M, F, C, M_pad, C_pad = _prepare(x, w_fc, bias, compute_dtype)
    item = x_c.dtype.itemsize
    tm = _pick_tm(M_pad, F, C_pad, item)
    grid = (pl.cdiv(M_pad, tm),)

    idx_p = pl.pallas_call(
        functools.partial(_argmax_kernel, num_classes=C),
        out_shape=jax.ShapeDtypeStruct((M_pad, 1), jnp.int32),
        grid_spec=pltpu.PrefetchScalarGridSpec(
            num_scalar_prefetch=0,
            grid=grid,
            in_specs=_in_specs(tm, F, C_pad),
            out_specs=pl.BlockSpec((tm, 1), lambda i: (i, 0)),
        ),
        compiler_params=pltpu.CompilerParams(
            dimension_semantics=("parallel",),
        ),
        cost_estimate=pl.CostEstimate(
            flops=2 * M * F * C,
            transcendentals=0,
            bytes_accessed=(x_c.size * item + w_p.size * item
                            + b_p.size * 4 + M_pad * 4),
        ),
    )(x_c, w_p, b_p)
    return idx_p[:M, 0]


def init_linear_params(key, num_features, num_classes):
    """nn.Linear default init U(-1/sqrt(fan_in), 1/sqrt(fan_in)); weight is
    stored pre-transposed as [num_features, num_classes]."""
    k_w, k_b = jax.random.split(key)
    bound = 1.0 / jnp.sqrt(jnp.float32(num_features))
    w_fc = jax.random.uniform(k_w, (num_features, num_classes), jnp.float32,
                              -bound, bound)
    bias = jax.random.uniform(k_b, (num_classes,), jnp.float32, -bound, bound)
    return w_fc, bias


def _ref_forward(x, w_fc, bias, compute_dtype=jnp.bfloat16):
    """Pure-JAX reference using the same input rounding as the kernel."""
    xr = x.astype(compute_dtype).astype(jnp.float32)
    wr = w_fc.astype(compute_dtype).astype(jnp.float32)
    return xr @ wr + bias.astype(jnp.float32)


if __name__ == "__main__":
    # --- Shapes from the reference PyTorch script -------------------------
    X = jnp.array([[1, 2, 3], [4, 5, 6], [7, 8, 9], [10, 11, 12]],
                  dtype=jnp.float32)
    y = jnp.array([0, 1, 2, 3], dtype=jnp.int32)
    num_classes = int(jnp.max(y)) + 1     # 4
    num_features = X.shape[1]             # 3

    key = jax.random.PRNGKey(0)
    w_fc, bias = init_linear_params(key, num_features, num_classes)

    logits = jax.block_until_ready(logistic_regression_forward(X, w_fc, bias))
    ref = _ref_forward(X, w_fc, bias)
    assert logits.shape == (4, num_classes)
    assert jnp.allclose(logits, ref, atol=1e-3, rtol=1e-3)

    preds = jax.block_until_ready(predict(X, w_fc, bias))
    assert preds.shape == (4,)
    assert jnp.array_equal(preds, jnp.argmax(ref, axis=1))

    # --- Multi-tile grid: resident W reused across M tiles ----------------
    k1, k2, k3 = jax.random.split(jax.random.PRNGKey(1), 3)
    M2, F2, C2 = 96, 384, 160
    X2 = jax.random.normal(k1, (M2, F2), jnp.float32)
    W2 = jax.random.normal(k2, (F2, C2), jnp.float32) * 0.05
    B2 = jax.random.normal(k3, (C2,), jnp.float32)
    out2 = jax.block_until_ready(logistic_regression_forward(X2, W2, B2))
    ref2 = _ref_forward(X2, W2, B2)
    assert out2.shape == (M2, C2)
    assert jnp.allclose(out2, ref2, atol=5e-3, rtol=5e-3)

    # --- Non-sublane-aligned M, small C: exercises the masked boundary block
    # --- and the -inf masking of padded class lanes in the fused argmax ----
    k4, k5, k6 = jax.random.split(jax.random.PRNGKey(2), 3)
    M3, F3, C3 = 100, 256, 10
    X3 = jax.random.normal(k4, (M3, F3), jnp.float32)
    W3 = jax.random.normal(k5, (F3, C3), jnp.float32) * 0.1
    B3 = jax.random.normal(k6, (C3,), jnp.float32)
    out3 = jax.block_until_ready(logistic_regression_forward(X3, W3, B3))
    ref3 = _ref_forward(X3, W3, B3)
    assert out3.shape == (M3, C3)
    assert jnp.allclose(out3, ref3, atol=5e-3, rtol=5e-3)
    preds3 = jax.block_until_ready(predict(X3, W3, B3))
    assert preds3.shape == (M3,)
    assert jnp.array_equal(preds3, jnp.argmax(ref3, axis=1))

    # TODO(synk): fit() (CrossEntropyLoss + SGD training loop) is host-side
    # training glue, not a forward-pass op, and is intentionally not a kernel.
    print("KERNEL_OK")
</pallas_src>

<mosaic_0001>
module attributes {stable_mosaic.version = 11 : i64} {
  func.func @_linear_kernel(%arg0: i32, %arg1: memref<8x3xbf16, #tpu.memory_space<vmem>>, %arg2: memref<3x128xbf16, #tpu.memory_space<vmem>>, %arg3: memref<1x128xf32, #tpu.memory_space<vmem>>, %arg4: memref<8x128xf32, #tpu.memory_space<vmem>>) attributes {dimension_semantics = [#tpu.dimension_semantics<parallel>], iteration_bounds = array<i64: 1>, scalar_prefetch = 0 : i64, scratch_operands = 0 : i64, tpu.core_type = #tpu.core_type<tc>, window_params = [{transform_indices = @transform_0, window_bounds = array<i64: 8, 3>}, {pipeline_mode = #tpu.pipeline_mode<synchronous>, transform_indices = @transform_1, window_bounds = array<i64: 3, 128>}, {pipeline_mode = #tpu.pipeline_mode<synchronous>, transform_indices = @transform_2, window_bounds = array<i64: 1, 128>}, {transform_indices = @transform_3, window_bounds = array<i64: 8, 128>}]} {
    %c0 = arith.constant 0 : index
    %c0_0 = arith.constant 0 : index
    %0 = vector.load %arg1[%c0, %c0_0] : memref<8x3xbf16, #tpu.memory_space<vmem>>, vector<8x3xbf16>
    %c0_1 = arith.constant 0 : index
    %c0_2 = arith.constant 0 : index
    %1 = vector.load %arg2[%c0_1, %c0_2] : memref<3x128xbf16, #tpu.memory_space<vmem>>, vector<3x128xbf16>
    %cst = arith.constant dense<0.000000e+00> : vector<8x128xf32>
    %2 = tpu.matmul %0, %1, %cst {dimension_numbers = #tpu.dot_dimension_numbers<[1], [0], [0], [1], [0, 0, 1, 1], [], []>} : vector<8x3xbf16>, vector<3x128xbf16>, vector<8x128xf32> -> vector<8x128xf32>
    %c0_3 = arith.constant 0 : index
    %c0_4 = arith.constant 0 : index
    %3 = vector.load %arg3[%c0_3, %c0_4] : memref<1x128xf32, #tpu.memory_space<vmem>>, vector<1x128xf32>
    %4 = vector.broadcast %3 : vector<1x128xf32> to vector<8x128xf32>
    %5 = arith.addf %2, %4 : vector<8x128xf32>
    %c0_5 = arith.constant 0 : index
    %c0_6 = arith.constant 0 : index
    %6 = vector.load %arg4[%c0_5, %c0_6] : memref<8x128xf32, #tpu.memory_space<vmem>>, vector<8x128xf32>
    tpu.vector_store %arg4[%c0_5, %c0_6], %5 {strides = array<i32>} : memref<8x128xf32, #tpu.memory_space<vmem>>, vector<8x128xf32>,
    return
  }
  func.func @transform_0(%arg0: i32) -> (i32, i32) {
    %c0_i32 = arith.constant 0 : i32
    %c0_i32_0 = arith.constant 0 : i32
    return %arg0, %c0_i32 : i32, i32
  }
  func.func @transform_1(%arg0: i32) -> (i32, i32) {
    %c0_i32 = arith.constant 0 : i32
    %c0_i32_0 = arith.constant 0 : i32
    %c0_i32_1 = arith.constant 0 : i32
    return %c0_i32, %c0_i32_0 : i32, i32
  }
  func.func @transform_2(%arg0: i32) -> (i32, i32) {
    %c0_i32 = arith.constant 0 : i32
    %c0_i32_0 = arith.constant 0 : i32
    %c0_i32_1 = arith.constant 0 : i32
    return %c0_i32, %c0_i32_0 : i32, i32
  }
  func.func @transform_3(%arg0: i32) -> (i32, i32) {
    %c0_i32 = arith.constant 0 : i32
    %c0_i32_0 = arith.constant 0 : i32
    return %arg0, %c0_i32 : i32, i32
  }
}

</mosaic_0001>

<bundles_post_ra>
// kernel: logistic_regression_forward.1
= control target key start
LH: loop header
LB: loop body
LE: loop exit
PB: predicated region body
PF: predicated region fallthrough
CT: control target
= control target key end

     0   :  { %vm28_vm0 = vcmask 1040384   ;;  %vm29_vm1 = vcmask 1041408   ;;  %v93_v0 = vmov 0.0   ;;  %v94_v2 = vmov 65535   ;;  %s128_s1 = inlined_call_operand.vmem [shape: bf16[3,128], index: 1, kind: input, shape index: {}]   ;;  %s129_s0 = inlined_call_operand.vmem [shape: bf16[8,3], index: 0, kind: input, shape index: {}]   ;;  %s130_s2 = inlined_call_operand.vmem [shape: f32[1,128], index: 2, kind: input, shape index: {}]   ;;  %s131_s3 = inlined_call_operand.vmem [shape: f32[8,128], index: 3, kind: output, shape index: {}]  }
   0x1   :  { %84 = vmatprep.subr.bf16.mxu0 %v93_v0  ;;  %v16_v1 = vld [vmem:[%s128_s1] sm:$0x3]  ;;  %v30_v3 = vsel %vm28_vm0, 4294967295, %v94_v2  ;;  %vm95_vm2 = vmmov 0   ;;  %vm24_vm3 = vcmask 23552  }
   0x2   :  { %v31_v4 = vsel %vm29_vm1, %v30_v3, 0  ;;  %86 = vmatprep.mubr.msk.bf16.mxu0 %vm95_vm2, %v93_v0  ;;  %v15_v6 = vld [vmem:[%s129_s0] sm:$0xf] }
   0x3   :  { %v33_v5 = vand.u32 %v31_v4, %v16_v1  ;;  %v80_v7 = vld [vmem:[%s130_s2] ss:$0 sm:$0xff] }
   0x5   :  { %85 = vmatpush3.bf16.msra.mxu0 %v33_v5 }
   0x8   :  { %87 = vmatmul.mubr.msk.bf16.vlgmr.msra.gmra.mrb[0].mxu0 %vm24_vm3, %v15_v6 }
  0xdb   :  { %v69_v8 = vpop.f32.mrb[0].mxu0 }
  0xdc   :  { %v70_v9 = vadd.f32 %v80_v7, %v69_v8  ;;  %v88_v10 = vpop.f32.mrb[1].mxu0 }
  0xdd   :  { %v72_v11 = vpop.f32.mrb[2].mxu0 }
  0xde   :  { %75 = vst [vmem:[%s131_s3] sm:$0xff] %v70_v9  ;;  %v89_v12 = vpop.f32.mrb[3].mxu0 }

</bundles_post_ra>
